<compile_context>
chip_gen: v6e
topology: v6e:2x2x1
jax: 0.10.0
libtpu: 0.0.40
codegen_flags: <defaults>
</compile_context>

<pallas_src>
import functools

import jax
import jax.numpy as jnp
from jax.experimental import pallas as pl
from jax.experimental.pallas import tpu as pltpu

_LANE = 128
_VMEM_LIMIT = 32 * 1024 * 1024  # safe on v5e/v6e (128 MiB) and v7x (64 MiB) physical VMEM


def _support_kernel(x_ref, w_ref, s_ref):
    # support tile = X_tile @ W, f32 accumulation on the MXU.
    s_ref[...] = jnp.dot(
        x_ref[...], w_ref[...], preferred_element_type=jnp.float32
    ).astype(s_ref.dtype)


def _aggregate_kernel(a_ref, s_ref, b_ref, o_ref, acc_ref):
    # out tile = sum_k A[i, k] @ support[k] + bias   (K axis is grid axis 1)
    k = pl.program_id(1)

    @pl.when(k == 0)
    def _():
        acc_ref[...] = jnp.zeros_like(acc_ref)

    acc_ref[...] += jnp.dot(
        a_ref[...], s_ref[...], preferred_element_type=jnp.float32
    )

    @pl.when(k == pl.num_programs(1) - 1)
    def _():
        o_ref[...] = (acc_ref[...] + b_ref[...]).astype(o_ref.dtype)


def _round_up(x, m):
    return (x + m - 1) // m * m


def _pick_row_tile(n):
    # Prefer 256-row tiles (full MXU M width on v6e/v7x) but keep >= 2 row
    # steps when possible so the "parallel" axis can shard across v7x's 2 TCs.
    if n >= 512 and n % 256 == 0:
        return 256
    if n % 128 == 0:
        return 128
    return n


def _pick_k_tile(n):
    # Single K step when the support matrix / adjacency row-slab is small;
    # otherwise bound per-step VMEM (important once N reaches multi-K on v7x).
    if n <= 2048:
        return n
    if n % 512 == 0:
        return 512
    return n  # TODO(synk): pad ragged large-N graphs to a multiple of 512.


@functools.partial(jax.jit, static_argnames=("compute_dtype",))
def graph_convolution(adjacency, features, weight, bias=None, *,
                      compute_dtype=jnp.bfloat16):
    N, D_in = features.shape
    D_out = weight.shape[1]
    assert adjacency.shape == (N, N)

    out_dtype = features.dtype
    d_pad = max(_LANE, _round_up(D_out, _LANE))  # lane-dense output width

    if bias is None:
        bias = jnp.zeros((D_out,), dtype=jnp.float32)

    # Zero-pad weight / bias columns out to the lane-dense width; padded
    # output columns compute to exactly 0 and are sliced off below.
    w_p = jnp.zeros((D_in, d_pad), dtype=compute_dtype).at[:, :D_out].set(
        weight.astype(compute_dtype))
    b_p = jnp.zeros((1, d_pad), dtype=jnp.float32).at[:, :D_out].set(
        bias.reshape(1, D_out).astype(jnp.float32))

    a = adjacency.astype(compute_dtype)
    x = features.astype(compute_dtype)

    tile_m = _pick_row_tile(N)
    tile_k = _pick_k_tile(N)
    assert N % tile_m == 0 and N % tile_k == 0

    in_bytes = jnp.dtype(compute_dtype).itemsize
    out_bytes = jnp.dtype(out_dtype).itemsize

    # ---- pass 1: support = X @ W_pad  (computed exactly once) ----
    support = pl.pallas_call(
        _support_kernel,
        out_shape=jax.ShapeDtypeStruct((N, d_pad), compute_dtype),
        grid_spec=pltpu.PrefetchScalarGridSpec(
            num_scalar_prefetch=0,
            grid=(N // tile_m,),
            in_specs=[
                pl.BlockSpec((tile_m, D_in), lambda i: (i, 0)),   # X row tile
                pl.BlockSpec((D_in, d_pad), lambda i: (0, 0)),    # full (padded) weight
            ],
            out_specs=pl.BlockSpec((tile_m, d_pad), lambda i: (i, 0)),
        ),
        compiler_params=pltpu.CompilerParams(
            dimension_semantics=("parallel",),
            vmem_limit_bytes=_VMEM_LIMIT,
        ),
        cost_estimate=pl.CostEstimate(
            flops=2 * N * D_in * d_pad,
            transcendentals=0,
            bytes_accessed=(N * D_in + D_in * d_pad + N * d_pad) * in_bytes,
        ),
    )(x, w_p)

    # ---- pass 2: out = A @ support + bias  (row-parallel, K-accumulated) ----
    out_padded = pl.pallas_call(
        _aggregate_kernel,
        out_shape=jax.ShapeDtypeStruct((N, d_pad), out_dtype),
        grid_spec=pltpu.PrefetchScalarGridSpec(
            num_scalar_prefetch=0,
            grid=(N // tile_m, N // tile_k),
            in_specs=[
                pl.BlockSpec((tile_m, tile_k), lambda i, k: (i, k)),  # adjacency tile
                pl.BlockSpec((tile_k, d_pad), lambda i, k: (k, 0)),   # support K slab
                pl.BlockSpec((1, d_pad), lambda i, k: (0, 0)),        # bias (f32)
            ],
            out_specs=pl.BlockSpec((tile_m, d_pad), lambda i, k: (i, 0)),
            scratch_shapes=[pltpu.VMEM((tile_m, d_pad), jnp.float32)],
        ),
        compiler_params=pltpu.CompilerParams(
            dimension_semantics=("parallel", "arbitrary"),
            vmem_limit_bytes=_VMEM_LIMIT,
        ),
        cost_estimate=pl.CostEstimate(
            flops=2 * N * N * d_pad,
            transcendentals=0,
            bytes_accessed=(N * N + N * d_pad) * in_bytes + N * d_pad * out_bytes,
        ),
    )(a, support, b_p)

    return out_padded[:, :D_out]


def kaiming_uniform(key, shape, dtype=jnp.float32):
    # torch.nn.init.kaiming_uniform_ defaults (a=0, leaky_relu gain=sqrt(2),
    # fan_in = tensor.size(1)): bound = sqrt(6 / fan_in).
    fan_in = shape[1]
    bound = (6.0 / fan_in) ** 0.5
    return jax.random.uniform(key, shape, dtype, minval=-bound, maxval=bound)


if __name__ == "__main__":
    key = jax.random.PRNGKey(0)
    k_adj, k_x, k_w = jax.random.split(key, 3)

    N, D_in, D_out = 256, 128, 64

    # Synthetic dense-materialized normalized adjacency: sparse random mask,
    # symmetrized, self-loops, row-normalized — deterministic.
    mask = (jax.random.uniform(k_adj, (N, N)) < 0.05).astype(jnp.float32)
    adj = jnp.maximum(mask, mask.T) + jnp.eye(N, dtype=jnp.float32)
    adj = adj / jnp.sum(adj, axis=1, keepdims=True)

    features = jax.random.normal(k_x, (N, D_in), dtype=jnp.float32)

    # Parameters (deterministic init mirroring reset_parameters()).
    weight = kaiming_uniform(k_w, (D_in, D_out))
    bias = jnp.zeros((D_out,), dtype=jnp.float32)

    out = graph_convolution(adj, features, weight, bias)
    out = jax.block_until_ready(out)
    assert out.shape == (N, D_out)

    # Reference 1: matched precision (same bf16 inputs, f32 accumulation) —
    # this is the strict kernel-correctness check.
    a16 = adj.astype(jnp.bfloat16)
    x16 = features.astype(jnp.bfloat16)
    w16 = weight.astype(jnp.bfloat16)
    sup16 = jnp.dot(x16, w16, preferred_element_type=jnp.float32).astype(jnp.bfloat16)
    ref_bf16 = jnp.dot(a16, sup16, preferred_element_type=jnp.float32) + bias
    assert jnp.allclose(out, ref_bf16, atol=1e-3, rtol=1e-3), "mismatch vs bf16 reference"

    # Reference 2: full-f32 end-to-end sanity check of the bf16 MXU path.
    ref_f32 = adj @ (features @ weight) + bias
    assert jnp.allclose(out, ref_f32, atol=1e-1, rtol=5e-2), "bf16 path drifted from f32 reference"

    print("KERNEL_OK")
</pallas_src>

<mosaic_0001>
module attributes {stable_mosaic.version = 11 : i64} {
  func.func @_support_kernel(%arg0: i32, %arg1: memref<128x128xbf16, #tpu.memory_space<vmem>>, %arg2: memref<128x128xbf16, #tpu.memory_space<vmem>>, %arg3: memref<128x128xbf16, #tpu.memory_space<vmem>>) attributes {dimension_semantics = [#tpu.dimension_semantics<parallel>], iteration_bounds = array<i64: 2>, scalar_prefetch = 0 : i64, scratch_operands = 0 : i64, tpu.core_type = #tpu.core_type<tc>, window_params = [{transform_indices = @transform_0, window_bounds = array<i64: 128, 128>}, {pipeline_mode = #tpu.pipeline_mode<synchronous>, transform_indices = @transform_1, window_bounds = array<i64: 128, 128>}, {transform_indices = @transform_2, window_bounds = array<i64: 128, 128>}]} {
    %c0 = arith.constant 0 : index
    %c0_0 = arith.constant 0 : index
    %0 = vector.load %arg1[%c0, %c0_0] : memref<128x128xbf16, #tpu.memory_space<vmem>>, vector<128x128xbf16>
    %c0_1 = arith.constant 0 : index
    %c0_2 = arith.constant 0 : index
    %1 = vector.load %arg2[%c0_1, %c0_2] : memref<128x128xbf16, #tpu.memory_space<vmem>>, vector<128x128xbf16>
    %cst = arith.constant dense<0.000000e+00> : vector<128x128xf32>
    %2 = tpu.matmul %0, %1, %cst {dimension_numbers = #tpu.dot_dimension_numbers<[1], [0], [0], [1], [0, 0, 1, 1], [], []>} : vector<128x128xbf16>, vector<128x128xbf16>, vector<128x128xf32> -> vector<128x128xf32>
    %3 = arith.truncf %2 : vector<128x128xf32> to vector<128x128xbf16>
    %c0_3 = arith.constant 0 : index
    %c0_4 = arith.constant 0 : index
    %4 = vector.load %arg3[%c0_3, %c0_4] : memref<128x128xbf16, #tpu.memory_space<vmem>>, vector<128x128xbf16>
    tpu.vector_store %arg3[%c0_3, %c0_4], %3 {strides = array<i32>} : memref<128x128xbf16, #tpu.memory_space<vmem>>, vector<128x128xbf16>,
    return
  }
  func.func @transform_0(%arg0: i32) -> (i32, i32) {
    %c0_i32 = arith.constant 0 : i32
    %c0_i32_0 = arith.constant 0 : i32
    return %arg0, %c0_i32 : i32, i32
  }
  func.func @transform_1(%arg0: i32) -> (i32, i32) {
    %c0_i32 = arith.constant 0 : i32
    %c0_i32_0 = arith.constant 0 : i32
    %c0_i32_1 = arith.constant 0 : i32
    return %c0_i32, %c0_i32_0 : i32, i32
  }
  func.func @transform_2(%arg0: i32) -> (i32, i32) {
    %c0_i32 = arith.constant 0 : i32
    %c0_i32_0 = arith.constant 0 : i32
    return %arg0, %c0_i32 : i32, i32
  }
}

module attributes {stable_mosaic.version = 11 : i64} {
  func.func @_aggregate_kernel(%arg0: i32, %arg1: i32, %arg2: memref<128x256xbf16, #tpu.memory_space<vmem>>, %arg3: memref<256x128xbf16, #tpu.memory_space<vmem>>, %arg4: memref<1x128xf32, #tpu.memory_space<vmem>>, %arg5: memref<128x128xf32, #tpu.memory_space<vmem>>, %arg6: memref<128x128xf32, #tpu.memory_space<vmem>>) attributes {dimension_semantics = [#tpu.dimension_semantics<parallel>, #tpu.dimension_semantics<arbitrary>], iteration_bounds = array<i64: 2, 1>, scalar_prefetch = 0 : i64, scratch_operands = 1 : i64, tpu.core_type = #tpu.core_type<tc>, window_params = [{transform_indices = @transform_0, window_bounds = array<i64: 128, 256>}, {transform_indices = @transform_1, window_bounds = array<i64: 256, 128>}, {pipeline_mode = #tpu.pipeline_mode<synchronous>, transform_indices = @transform_2, window_bounds = array<i64: 1, 128>}, {transform_indices = @transform_3, window_bounds = array<i64: 128, 128>}]} {
    %c0_i32 = arith.constant 0 : i32
    %0 = arith.cmpi eq, %arg1, %c0_i32 : i32
    %1 = arith.extui %0 : i1 to i32
    %c0_i32_0 = arith.constant 0 : i32
    %2 = arith.cmpi ne, %1, %c0_i32_0 : i32
    scf.if %2 {
      %cst_10 = arith.constant 0.000000e+00 : f32
      %12 = vector.broadcast %cst_10 : f32 to vector<128x128xf32>
      %c0_11 = arith.constant 0 : index
      %c0_12 = arith.constant 0 : index
      %13 = vector.load %arg6[%c0_11, %c0_12] : memref<128x128xf32, #tpu.memory_space<vmem>>, vector<128x128xf32>
      tpu.vector_store %arg6[%c0_11, %c0_12], %12 {strides = array<i32>} : memref<128x128xf32, #tpu.memory_space<vmem>>, vector<128x128xf32>,
    } else {
    }
    %c0 = arith.constant 0 : index
    %c0_1 = arith.constant 0 : index
    %3 = vector.load %arg6[%c0, %c0_1] : memref<128x128xf32, #tpu.memory_space<vmem>>, vector<128x128xf32>
    %c0_2 = arith.constant 0 : index
    %c0_3 = arith.constant 0 : index
    %4 = vector.load %arg2[%c0_2, %c0_3] : memref<128x256xbf16, #tpu.memory_space<vmem>>, vector<128x256xbf16>
    %c0_4 = arith.constant 0 : index
    %c0_5 = arith.constant 0 : index
    %5 = vector.load %arg3[%c0_4, %c0_5] : memref<256x128xbf16, #tpu.memory_space<vmem>>, vector<256x128xbf16>
    %cst = arith.constant dense<0.000000e+00> : vector<128x128xf32>
    %6 = tpu.matmul %4, %5, %cst {dimension_numbers = #tpu.dot_dimension_numbers<[1], [0], [0], [1], [0, 0, 1, 1], [], []>} : vector<128x256xbf16>, vector<256x128xbf16>, vector<128x128xf32> -> vector<128x128xf32>
    %7 = arith.addf %3, %6 : vector<128x128xf32>
    %c0_6 = arith.constant 0 : index
    %c0_7 = arith.constant 0 : index
    %8 = vector.load %arg6[%c0_6, %c0_7] : memref<128x128xf32, #tpu.memory_space<vmem>>, vector<128x128xf32>
    tpu.vector_store %arg6[%c0_6, %c0_7], %7 {strides = array<i32>} : memref<128x128xf32, #tpu.memory_space<vmem>>, vector<128x128xf32>,
    %c0_i32_8 = arith.constant 0 : i32
    %9 = arith.cmpi eq, %arg1, %c0_i32_8 : i32
    %10 = arith.extui %9 : i1 to i32
    %c0_i32_9 = arith.constant 0 : i32
    %11 = arith.cmpi ne, %10, %c0_i32_9 : i32
    scf.if %11 {
      %c0_10 = arith.constant 0 : index
      %c0_11 = arith.constant 0 : index
      %12 = vector.load %arg6[%c0_10, %c0_11] : memref<128x128xf32, #tpu.memory_space<vmem>>, vector<128x128xf32>
      %c0_12 = arith.constant 0 : index
      %c0_13 = arith.constant 0 : index
      %13 = vector.load %arg4[%c0_12, %c0_13] : memref<1x128xf32, #tpu.memory_space<vmem>>, vector<1x128xf32>
      %14 = vector.broadcast %13 : vector<1x128xf32> to vector<128x128xf32>
      %15 = arith.addf %12, %14 : vector<128x128xf32>
      %c0_14 = arith.constant 0 : index
      %c0_15 = arith.constant 0 : index
      %16 = vector.load %arg5[%c0_14, %c0_15] : memref<128x128xf32, #tpu.memory_space<vmem>>, vector<128x128xf32>
      tpu.vector_store %arg5[%c0_14, %c0_15], %15 {strides = array<i32>} : memref<128x128xf32, #tpu.memory_space<vmem>>, vector<128x128xf32>,
    } else {
    }
    return
  }
  func.func @transform_0(%arg0: i32, %arg1: i32) -> (i32, i32) {
    %c0_i32 = arith.constant 0 : i32
    return %arg0, %arg1 : i32, i32
  }
  func.func @transform_1(%arg0: i32, %arg1: i32) -> (i32, i32) {
    %c0_i32 = arith.constant 0 : i32
    %c0_i32_0 = arith.constant 0 : i32
    return %arg1, %c0_i32 : i32, i32
  }
  func.func @transform_2(%arg0: i32, %arg1: i32) -> (i32, i32) {
    %c0_i32 = arith.constant 0 : i32
    %c0_i32_0 = arith.constant 0 : i32
    %c0_i32_1 = arith.constant 0 : i32
    return %c0_i32, %c0_i32_0 : i32, i32
  }
  func.func @transform_3(%arg0: i32, %arg1: i32) -> (i32, i32) {
    %c0_i32 = arith.constant 0 : i32
    %c0_i32_0 = arith.constant 0 : i32
    return %arg0, %c0_i32 : i32, i32
  }
}

</mosaic_0001>

<bundles_post_ra>
// kernel: graph_convolution.3
= control target key start
LH: loop header
LB: loop body
LE: loop exit
PB: predicated region body
PF: predicated region fallthrough
CT: control target
= control target key end

     0   :  { %s996_s12 = smov 0   ;;  %s998_s13 = smov 0   ;;  %s1141_s0 = inlined_call_operand.vmem [shape: bf16[256,256], index: 0, kind: input, shape index: {}]   ;;  %s1142_s1 = inlined_call_operand.vmem [shape: bf16[256,128], index: 1, kind: input, shape index: {}]   ;;  %s1143_s2 = inlined_call_operand.vmem [shape: f32[1,128], index: 2, kind: input, shape index: {}]   ;;  %s1144_s3 = inlined_call_operand.vmem [shape: f32[256,128], index: 3, kind: output, shape index: {}]  }
   0x1   :  { %s1000_s14 = smov 0  }
   0x2 LB: > { %s25_s15 = sadd.s32 1, %s970_s13  ;;  %p766_p0 = scmp.ge.s32.totalorder %s974_s14, 1  ;;  %s974_s14 = sphi %s1000_s14, %s13_s14   ;;  %s970_s13 = sphi %s998_s13, %s1146_s13   ;;  %s966_s12 = sphi %s996_s12, %s1145_s12  }
   0x3   : > { %p27_p1 = scmp.ge.s32.totalorder %s25_s15, 2  ;;  %p169_p2 = scmp.lt.s32.totalorder %s974_s14, 3 }
   0x5   : > { %s1148_s15 = smov (%p27_p1, %s25_s15), 0  ;;  %p170_p3 = pnand %p766_p0, %p169_p2 }
   0x6   : > { %s767_s18 = sshll.u32 (!%p170_p3), %s966_s12, 4 }
   0x7   : > { %173 = sbr.rel (%p170_p3) target bundleno = 273 (0x111), region = 32  ;;  %p205_p4 = scmp.lt.s32.totalorder (!%p170_p3), %s767_s18, 31 }
   0xc   : > { %v912_v0 = vld [vmem:[%s1142_s1 + $0x78] sm:$0xff]   ;;  %v914_v2 = vld [vmem:[%s1142_s1 + $0x70] sm:$0xff]   ;;  %v916_v4 = vld [vmem:[%s1142_s1 + $0x68] sm:$0xff]   ;;  %s1150_s18 = smov (!%p205_p4, %s767_s18), 31 }
   0xd   : > { %v913_v1 = vld [vmem:[%s1142_s1 + $0x38] sm:$0xff]   ;;  %808 = vmatprep.subr.bf16.mxu0 %v912_v0  ;;  %872 = vmatprep.subr.bf16.mxu1 %v912_v0  ;;  %v915_v3 = vld [vmem:[%s1142_s1 + $0x30] sm:$0xff]   ;;  %v917_v5 = vld [vmem:[%s1142_s1 + $0x28] sm:$0xff]   ;;  %s807_s6 = sshll.u32 %s1150_s18, 3 }
   0xe   : > { %809 = vmatpush3.bf16.msra.mxu0 %v913_v1  ;;  %880 = vmatpush3.bf16.msra.mxu1 %v913_v1  ;;  %v918_v6 = vld [vmem:[%s1142_s1 + $0x60] sm:$0xff]   ;;  %v920_v8 = vld [vmem:[%s1142_s1 + $0x58] sm:$0xff]   ;;  %s1049_s11 = scalar_lea.vmem %s1141_s0, %s807_s6  ;;  %v922_v10 = vld [vmem:[%s1142_s1 + $0x50] sm:$0xff]   ;;  %s1098_s8 = scalar_lea.vmem %s1144_s3, %s807_s6 }
   0xf   : > { %810 = vmatprep.subr.bf16.mxu0 %v914_v2  ;;  %873 = vmatprep.subr.bf16.mxu1 %v914_v2  ;;  %v919_v7 = vld [vmem:[%s1142_s1 + $0x20] sm:$0xff]   ;;  %v921_v9 = vld [vmem:[%s1142_s1 + $0x18] sm:$0xff]   ;;  %v923_v13 = vld [vmem:[%s1142_s1 + $0x10] sm:$0xff]  }
  0x10   : > { %v930_v11 = vld [vmem:[%s1049_s11 + $0x4] ss:$8 sps:$4 sm:$0xff]   ;;  %v928_v18 = vld [vmem:[%s1049_s11] ss:$8 sps:$4 sm:$0xff]   ;;  %v934_v20 = vld [vmem:[%s1049_s11 + $0x14] ss:$8 sps:$4 sm:$0xff]  }
  0x11   : > { %v933_v12 = vld [vmem:[%s1049_s11 + $0x44] ss:$8 sps:$4 sm:$0xff]   ;;  %520 = vmatprep.mubr.bf16.mxu0 %v930_v11  ;;  %v931_v19 = vld [vmem:[%s1049_s11 + $0x40] ss:$8 sps:$4 sm:$0xff]   ;;  %v936_v21 = vld [vmem:[%s1049_s11 + $0x54] ss:$8 sps:$4 sm:$0xff]  }
  0x12   : > { %811 = vmatpush3.bf16.msra.mxu0 %v915_v3  ;;  %881 = vmatpush3.bf16.msra.mxu1 %v915_v3  ;;  %v924_v14 = vld [vmem:[%s1142_s1 + $0x48] sm:$0xff]   ;;  %v926_v16 = vld [vmem:[%s1142_s1 + $0x40] sm:$0xff]   ;;  %v938_v22 = vld [vmem:[%s1049_s11 + $0x10] ss:$8 sps:$4 sm:$0xff]  }
  0x13   : > { %812 = vmatprep.subr.bf16.mxu0 %v916_v4  ;;  %874 = vmatprep.subr.bf16.mxu1 %v916_v4  ;;  %v925_v15 = vld [vmem:[%s1142_s1 + $0x8] sm:$0xff]   ;;  %v927_v17 = vld [vmem:[%s1142_s1] sm:$0xff]   ;;  %v939_v23 = vld [vmem:[%s1049_s11 + $0x50] ss:$8 sps:$4 sm:$0xff]  }
  0x14   : > { %552 = vmatprep.mubr.bf16.mxu1 %v933_v12  ;;  %v940_v24 = vld [vmem:[%s1049_s11 + $0x24] ss:$8 sps:$4 sm:$0xff]   ;;  %v944_v26 = vld [vmem:[%s1049_s11 + $0x20] ss:$8 sps:$4 sm:$0xff]   ;;  %v946_v28 = vld [vmem:[%s1049_s11 + $0x34] ss:$8 sps:$4 sm:$0xff]  }
  0x15   : > { %v942_v25 = vld [vmem:[%s1049_s11 + $0x64] ss:$8 sps:$4 sm:$0xff]   ;;  %v945_v27 = vld [vmem:[%s1049_s11 + $0x60] ss:$8 sps:$4 sm:$0xff]   ;;  %v948_v29 = vld [vmem:[%s1049_s11 + $0x74] ss:$8 sps:$4 sm:$0xff]  }
  0x16   : > { %813 = vmatpush3.bf16.msra.mxu0 %v917_v5  ;;  %882 = vmatpush3.bf16.msra.mxu1 %v917_v5  ;;  %v950_v30 = vld [vmem:[%s1049_s11 + $0x30] ss:$8 sps:$4 sm:$0xff]   ;;  %v1091_v35 = vld [vmem:[%s1143_s2] ss:$0 sm:$0xff] }
  0x17   : > { %814 = vmatprep.subr.bf16.mxu0 %v918_v6  ;;  %875 = vmatprep.subr.bf16.mxu1 %v918_v6  ;;  %v951_v31 = vld [vmem:[%s1049_s11 + $0x70] ss:$8 sps:$4 sm:$0xff]  }
  0x1a   : > { %815 = vmatpush3.bf16.msra.mxu0 %v919_v7  ;;  %883 = vmatpush3.bf16.msra.mxu1 %v919_v7 }
  0x1b   : > { %816 = vmatprep.subr.bf16.mxu0 %v920_v8  ;;  %876 = vmatprep.subr.bf16.mxu1 %v920_v8 }
  0x1e   : > { %817 = vmatpush3.bf16.msra.mxu0 %v921_v9  ;;  %884 = vmatpush3.bf16.msra.mxu1 %v921_v9 }
  0x1f   : > { %818 = vmatprep.subr.bf16.mxu0 %v922_v10  ;;  %877 = vmatprep.subr.bf16.mxu1 %v922_v10 }
  0x22   : > { %819 = vmatpush3.bf16.msra.mxu0 %v923_v13  ;;  %885 = vmatpush3.bf16.msra.mxu1 %v923_v13 }
  0x23   : > { %820 = vmatprep.subr.bf16.mxu0 %v924_v14  ;;  %878 = vmatprep.subr.bf16.mxu1 %v924_v14 }
  0x26   : > { %821 = vmatpush3.bf16.msra.mxu0 %v925_v15  ;;  %886 = vmatpush3.bf16.msra.mxu1 %v925_v15 }
  0x27   : > { %822 = vmatprep.subr.bf16.mxu0 %v926_v16  ;;  %879 = vmatprep.subr.bf16.mxu1 %v926_v16 }
  0x2a   : > { %823 = vmatpush3.bf16.msra.mxu0 %v927_v17  ;;  %887 = vmatpush3.bf16.msra.mxu1 %v927_v17 }
  0x2d   : > { %521 = vmatmul.mubr.bf16.vlgmr.msra.gmra.mxu0 %v928_v18  ;;  %553 = vmatmul.mubr.bf16.vlgmr.msra.gmra.mxu1 %v931_v19 }
  0x2e   : > { %528 = vmatprep.mubr.bf16.mxu0 %v934_v20  ;;  %560 = vmatprep.mubr.bf16.mxu1 %v936_v21 }
  0x35   : > { %529 = vmatmul.mubr.bf16.gmra.mxu0 %v938_v22  ;;  %561 = vmatmul.mubr.bf16.gmra.mxu1 %v939_v23 }
  0x36   : > { %536 = vmatprep.mubr.bf16.mxu0 %v940_v24  ;;  %568 = vmatprep.mubr.bf16.mxu1 %v942_v25 }
  0x3d   : > { %537 = vmatmul.mubr.bf16.gmra.mxu0 %v944_v26  ;;  %569 = vmatmul.mubr.bf16.gmra.mxu1 %v945_v27 }
  0x3e   : > { %544 = vmatprep.mubr.bf16.mxu0 %v946_v28  ;;  %576 = vmatprep.mubr.bf16.mxu1 %v948_v29 }
  0x45   : > { %545 = vmatmul.mubr.bf16.gmra.mxu0 %v950_v30  ;;  %577 = vmatmul.mubr.bf16.gmra.mxu1 %v951_v31 }
  0xed   : > { %v824_v32 = vpop.f32.mrf.mxu0  ;;  %v848_v33 = vpop.f32.mrf.mxu1 }
  0xef   : > { %v825_v34 = vpop.f32.mrf.mxu0  ;;  %v849_v36 = vpop.f32.mrf.mxu1 }
  0xf0   : > { %v826_v37 = vadd.f32 %v825_v34, %v824_v32  ;;  %v850_v38 = vadd.f32 %v849_v36, %v848_v33 }
  0xf1   : > { %v827_v39 = vpop.f32.mrf.mxu0  ;;  %v851_v40 = vpop.f32.mrf.mxu1 }
  0xf2   : > { %v643_v41 = vadd.f32 %v826_v37, %v1091_v35  ;;  %v651_v42 = vadd.f32 %v850_v38, %v1091_v35 }
  0xf3   : > { %v828_v43 = vpop.f32.mrf.mxu0  ;;  %v852_v44 = vpop.f32.mrf.mxu1 }
  0xf4   : > { %659 = vst [vmem:[%s1098_s8] sm:$0xff] %v643_v41  ;;  %667 = vst [vmem:[%s1098_s8 + $0x40] sm:$0xff] %v651_v42  ;;  %v829_v45 = vadd.f32 %v828_v43, %v827_v39  ;;  %v853_v46 = vadd.f32 %v852_v44, %v851_v40 }
  0xf5   : > { %v830_v47 = vpop.f32.mrf.mxu0  ;;  %v854_v48 = vpop.f32.mrf.mxu1 }
  0xf6   : > { %v644_v49 = vadd.f32 %v829_v45, %v1091_v35  ;;  %v652_v50 = vadd.f32 %v853_v46, %v1091_v35 }
  0xf7   : > { %v831_v51 = vpop.f32.mrf.mxu0  ;;  %v855_v52 = vpop.f32.mrf.mxu1 }
  0xf8   : > { %660 = vst [vmem:[%s1098_s8 + $0x8] sm:$0xff] %v644_v49  ;;  %668 = vst [vmem:[%s1098_s8 + $0x48] sm:$0xff] %v652_v50  ;;  %v832_v53 = vadd.f32 %v831_v51, %v830_v47  ;;  %v856_v54 = vadd.f32 %v855_v52, %v854_v48 }
  0xf9   : > { %v833_v55 = vpop.f32.mrf.mxu0  ;;  %v857_v56 = vpop.f32.mrf.mxu1 }
  0xfa   : > { %v645_v57 = vadd.f32 %v832_v53, %v1091_v35  ;;  %v653_v58 = vadd.f32 %v856_v54, %v1091_v35 }
  0xfb   : > { %v834_v59 = vpop.f32.mrf.mxu0  ;;  %v858_v60 = vpop.f32.mrf.mxu1 }
  0xfc   : > { %661 = vst [vmem:[%s1098_s8 + $0x10] sm:$0xff] %v645_v57  ;;  %669 = vst [vmem:[%s1098_s8 + $0x50] sm:$0xff] %v653_v58  ;;  %v835_v61 = vadd.f32 %v834_v59, %v833_v55  ;;  %v859_v62 = vadd.f32 %v858_v60, %v857_v56 }
  0xfd   : > { %v836_v63 = vpop.f32.mrf.mxu0  ;;  %v860_v0 = vpop.f32.mrf.mxu1 }
  0xfe   : > { %v646_v1 = vadd.f32 %v835_v61, %v1091_v35  ;;  %v654_v2 = vadd.f32 %v859_v62, %v1091_v35 }
  0xff   : > { %v837_v3 = vpop.f32.mrf.mxu0  ;;  %v861_v4 = vpop.f32.mrf.mxu1 }
 0x100   : > { %662 = vst [vmem:[%s1098_s8 + $0x18] sm:$0xff] %v646_v1  ;;  %670 = vst [vmem:[%s1098_s8 + $0x58] sm:$0xff] %v654_v2  ;;  %v838_v5 = vadd.f32 %v837_v3, %v836_v63  ;;  %v862_v6 = vadd.f32 %v861_v4, %v860_v0 }
 0x101   : > { %v839_v7 = vpop.f32.mrf.mxu0  ;;  %v863_v8 = vpop.f32.mrf.mxu1 }
 0x102   : > { %v647_v9 = vadd.f32 %v838_v5, %v1091_v35  ;;  %v655_v10 = vadd.f32 %v862_v6, %v1091_v35 }
 0x103   : > { %v840_v11 = vpop.f32.mrf.mxu0  ;;  %v864_v12 = vpop.f32.mrf.mxu1 }
 0x104   : > { %663 = vst [vmem:[%s1098_s8 + $0x20] sm:$0xff] %v647_v9  ;;  %671 = vst [vmem:[%s1098_s8 + $0x60] sm:$0xff] %v655_v10  ;;  %v841_v13 = vadd.f32 %v840_v11, %v839_v7  ;;  %v865_v14 = vadd.f32 %v864_v12, %v863_v8 }
 0x105   : > { %v842_v15 = vpop.f32.mrf.mxu0  ;;  %v866_v16 = vpop.f32.mrf.mxu1 }
 0x106   : > { %v648_v17 = vadd.f32 %v841_v13, %v1091_v35  ;;  %v656_v18 = vadd.f32 %v865_v14, %v1091_v35 }
 0x107   : > { %v843_v19 = vpop.f32.mrf.mxu0  ;;  %v867_v20 = vpop.f32.mrf.mxu1 }
 0x108   : > { %664 = vst [vmem:[%s1098_s8 + $0x28] sm:$0xff] %v648_v17  ;;  %672 = vst [vmem:[%s1098_s8 + $0x68] sm:$0xff] %v656_v18  ;;  %v844_v21 = vadd.f32 %v843_v19, %v842_v15  ;;  %v868_v22 = vadd.f32 %v867_v20, %v866_v16 }
 0x109   : > { %v845_v23 = vpop.f32.mrf.mxu0  ;;  %v869_v24 = vpop.f32.mrf.mxu1 }
 0x10a   : > { %v649_v25 = vadd.f32 %v844_v21, %v1091_v35  ;;  %v657_v26 = vadd.f32 %v868_v22, %v1091_v35 }
 0x10b   : > { %v846_v27 = vpop.f32.mrf.mxu0  ;;  %v870_v28 = vpop.f32.mrf.mxu1 }
 0x10c   : > { %665 = vst [vmem:[%s1098_s8 + $0x30] sm:$0xff] %v649_v25  ;;  %673 = vst [vmem:[%s1098_s8 + $0x70] sm:$0xff] %v657_v26  ;;  %v847_v29 = vadd.f32 %v846_v27, %v845_v23  ;;  %v871_v30 = vadd.f32 %v870_v28, %v869_v24 }
 0x10e   : > { %v650_v31 = vadd.f32 %v847_v29, %v1091_v35  ;;  %v658_v32 = vadd.f32 %v871_v30, %v1091_v35 }
 0x110   : > { %666 = vst [vmem:[%s1098_s8 + $0x38] sm:$0xff] %v650_v31  ;;  %674 = vst [vmem:[%s1098_s8 + $0x78] sm:$0xff] %v658_v32 }
 0x111 PF: > { %s13_s14 = sadd.s32 1, %s974_s14   ;;  %s1145_s12 = smov %s970_s13 }
 0x112   : > { %p10_p5 = scmp.ge.s32.totalorder %s13_s14, 4   ;;  %s1146_s13 = smov %s1148_s15 }
 0x114   :  { %12 = sbr.rel (!%p10_p5) target bundleno = 2 (0x2), region = 73 }

// kernel: graph_convolution.2
= control target key start
LH: loop header
LB: loop body
LE: loop exit
PB: predicated region body
PF: predicated region fallthrough
CT: control target
= control target key end

     0   :  { %s726_s9 = smov 0   ;;  %s784_s0 = inlined_call_operand.vmem [shape: bf16[256,128], index: 0, kind: input, shape index: {}]   ;;  %s785_s1 = inlined_call_operand.vmem [shape: bf16[128,128], index: 1, kind: input, shape index: {}]   ;;  %s786_s2 = inlined_call_operand.vmem [shape: bf16[256,128], index: 2, kind: output, shape index: {}]  }
   0x1 LB: > { %s509_s10 = sadd.s32 4294967295, %s709_s9   ;;  %p513_p0 = scmp.ge.s32.totalorder %s709_s9, 1  ;;  %s709_s9 = sphi %s726_s9, %s12_s9  }
   0x2   : > { %p113_p1 = scmp.lt.s32.totalorder %s709_s9, 3 }
   0x4   : > { %p114_p2 = pnand %p513_p0, %p113_p1 }
   0x5   : > { %s514_s13 = sshll.u32 (!%p114_p2), %s509_s10, 4 }
   0x6   : > { %117 = sbr.rel (%p114_p2) target bundleno = 254 (0xfe), region = 28  ;;  %p136_p3 = scmp.lt.s32.totalorder (!%p114_p2), %s514_s13, 31 }
   0xb   : > { %v687_v0 = vld [vmem:[%s785_s1 + $0x38] sm:$0xff]   ;;  %v688_v1 = vld [vmem:[%s785_s1 + $0x30] sm:$0xff]   ;;  %s788_s13 = smov (!%p136_p3, %s514_s13), 31  ;;  %v689_v2 = vld [vmem:[%s785_s1 + $0x28] sm:$0xff]  }
   0xc   : > { %631 = vmatprep.subr.bf16.mxu0 %v687_v0  ;;  %663 = vmatprep.subr.bf16.mxu1 %v687_v0  ;;  %s515_s18 = sshll.u32 %s788_s13, 2  ;;  %v690_v3 = vld [vmem:[%s785_s1 + $0x20] sm:$0xff]   ;;  %v691_v6 = vld [vmem:[%s785_s1 + $0x18] sm:$0xff]   ;;  %v692_v7 = vld [vmem:[%s785_s1 + $0x10] sm:$0xff]  }
   0xd   : > { %632 = vmatpush3.bf16.msra.mxu0 %v687_v0  ;;  %671 = vmatpush3.bf16.msra.mxu1 %v687_v0  ;;  %s751_s21 = scalar_lea.vmem %s784_s0, %s515_s18  ;;  %v693_v8 = vld [vmem:[%s785_s1 + $0x8] sm:$0xff]   ;;  %v694_v9 = vld [vmem:[%s785_s1] sm:$0xff]   ;;  %s145_s6 = scalar_lea.vmem %s786_s2, %s515_s18 }
   0xe   : > { %633 = vmatprep.subr.bf16.mxu0 %v688_v1  ;;  %664 = vmatprep.subr.bf16.mxu1 %v688_v1  ;;  %v695_v4 = vld [vmem:[%s751_s21] sm:$0xff]   ;;  %v697_v10 = vld [vmem:[%s751_s21 + $0x8] sm:$0xff]   ;;  %v699_v12 = vld [vmem:[%s751_s21 + $0x10] sm:$0xff]  }
   0xf   : > { %v696_v5 = vld [vmem:[%s751_s21 + $0x20] sm:$0xff]   ;;  %647 = vmatprep.mubr.bf16.mxu0 %v695_v4  ;;  %v698_v11 = vld [vmem:[%s751_s21 + $0x28] sm:$0xff]   ;;  %v700_v13 = vld [vmem:[%s751_s21 + $0x30] sm:$0xff]  }
  0x10   : > { %655 = vmatprep.mubr.bf16.mxu1 %v696_v5  ;;  %v701_v14 = vld [vmem:[%s751_s21 + $0x18] sm:$0xff]  }
  0x11   : > { %634 = vmatpush3.bf16.msra.mxu0 %v688_v1  ;;  %672 = vmatpush3.bf16.msra.mxu1 %v688_v1  ;;  %v702_v15 = vld [vmem:[%s751_s21 + $0x38] sm:$0xff]  }
  0x12   : > { %635 = vmatprep.subr.bf16.mxu0 %v689_v2  ;;  %665 = vmatprep.subr.bf16.mxu1 %v689_v2 }
  0x15   : > { %636 = vmatpush3.bf16.msra.mxu0 %v689_v2  ;;  %673 = vmatpush3.bf16.msra.mxu1 %v689_v2 }
  0x16   : > { %637 = vmatprep.subr.bf16.mxu0 %v690_v3  ;;  %666 = vmatprep.subr.bf16.mxu1 %v690_v3 }
  0x19   : > { %638 = vmatpush3.bf16.msra.mxu0 %v690_v3  ;;  %674 = vmatpush3.bf16.msra.mxu1 %v690_v3 }
  0x1a   : > { %639 = vmatprep.subr.bf16.mxu0 %v691_v6  ;;  %667 = vmatprep.subr.bf16.mxu1 %v691_v6 }
  0x1d   : > { %640 = vmatpush3.bf16.msra.mxu0 %v691_v6  ;;  %675 = vmatpush3.bf16.msra.mxu1 %v691_v6 }
  0x1e   : > { %641 = vmatprep.subr.bf16.mxu0 %v692_v7  ;;  %668 = vmatprep.subr.bf16.mxu1 %v692_v7 }
  0x21   : > { %642 = vmatpush3.bf16.msra.mxu0 %v692_v7  ;;  %676 = vmatpush3.bf16.msra.mxu1 %v692_v7 }
  0x22   : > { %643 = vmatprep.subr.bf16.mxu0 %v693_v8  ;;  %669 = vmatprep.subr.bf16.mxu1 %v693_v8 }
  0x25   : > { %644 = vmatpush3.bf16.msra.mxu0 %v693_v8  ;;  %677 = vmatpush3.bf16.msra.mxu1 %v693_v8 }
  0x26   : > { %645 = vmatprep.subr.bf16.mxu0 %v694_v9  ;;  %670 = vmatprep.subr.bf16.mxu1 %v694_v9 }
  0x29   : > { %646 = vmatpush3.bf16.msra.mxu0 %v694_v9  ;;  %678 = vmatpush3.bf16.msra.mxu1 %v694_v9 }
  0x2c   : > { %648 = vmatmul.mubr.bf16.vlgmr.msra.gmra.mxu0 %v697_v10  ;;  %656 = vmatmul.mubr.bf16.vlgmr.msra.gmra.mxu1 %v698_v11 }
  0x2d   : > { %651 = vmatprep.mubr.bf16.mxu0 %v699_v12  ;;  %659 = vmatprep.mubr.bf16.mxu1 %v700_v13 }
  0x34   : > { %652 = vmatmul.mubr.bf16.gmra.mxu0 %v701_v14  ;;  %660 = vmatmul.mubr.bf16.gmra.mxu1 %v702_v15 }
  0xec   : > { %v649_v16 = vpop.f32.mrf.mxu0  ;;  %v657_v17 = vpop.f32.mrf.mxu1 }
  0xee   : > { %v310_v18 = vpop.f32.mrf.mxu0  ;;  %v342_v19 = vpop.f32.mrf.mxu1 }
  0xf0   : > { %v650_v20 = vpop.f32.mrf.mxu0  ;;  %v658_v21 = vpop.f32.mrf.mxu1 }
  0xf1   : > { %v576_v22 = vpack.c.bf16 %v650_v20, %v649_v16  ;;  %v596_v23 = vpack.c.bf16 %v658_v21, %v657_v17 }
  0xf2   : > { %v313_v24 = vpop.f32.mrf.mxu0  ;;  %v345_v25 = vpop.f32.mrf.mxu1 }
  0xf3   : > { %608 = vst [vmem:[%s145_s6 + $0x8] sm:$0xff] %v576_v22   ;;  %612 = vst [vmem:[%s145_s6 + $0x28] sm:$0xff] %v596_v23   ;;  %v571_v26 = vpack.c.bf16 %v313_v24, %v310_v18  ;;  %v591_v27 = vpack.c.bf16 %v345_v25, %v342_v19 }
  0xf4   : > { %v653_v28 = vpop.f32.mrf.mxu0  ;;  %v661_v29 = vpop.f32.mrf.mxu1 }
  0xf5   : > { %572 = vst [vmem:[%s145_s6] sm:$0xff] %v571_v26   ;;  %611 = vst [vmem:[%s145_s6 + $0x20] sm:$0xff] %v591_v27  }
  0xf6   : > { %v326_v30 = vpop.f32.mrf.mxu0  ;;  %v358_v31 = vpop.f32.mrf.mxu1 }
  0xf8   : > { %v654_v32 = vpop.f32.mrf.mxu0  ;;  %v662_v33 = vpop.f32.mrf.mxu1 }
  0xf9   : > { %v586_v34 = vpack.c.bf16 %v654_v32, %v653_v28  ;;  %v606_v35 = vpack.c.bf16 %v662_v33, %v661_v29 }
  0xfa   : > { %v329_v36 = vpop.f32.mrf.mxu0  ;;  %v361_v37 = vpop.f32.mrf.mxu1 }
  0xfb   : > { %610 = vst [vmem:[%s145_s6 + $0x18] sm:$0xff] %v586_v34   ;;  %614 = vst [vmem:[%s145_s6 + $0x38] sm:$0xff] %v606_v35   ;;  %v581_v38 = vpack.c.bf16 %v329_v36, %v326_v30  ;;  %v601_v39 = vpack.c.bf16 %v361_v37, %v358_v31 }
  0xfd   : > { %609 = vst [vmem:[%s145_s6 + $0x10] sm:$0xff] %v581_v38   ;;  %613 = vst [vmem:[%s145_s6 + $0x30] sm:$0xff] %v601_v39  }
  0xfe PF: > { %s12_s9 = sadd.s32 1, %s709_s9  }
  0xff   : > { %p9_p4 = scmp.ge.s32.totalorder %s12_s9, 4  }
 0x101   :  { %11 = sbr.rel (!%p9_p4) target bundleno = 1 (0x1), region = 58 }

</bundles_post_ra>
